<compile_context>
chip_gen: v5e
topology: v5e:2x2
jax: 0.10.0
libtpu: 0.0.40
codegen_flags: <defaults>
</compile_context>

<pallas_src>
import functools

import jax
import jax.numpy as jnp
from jax.experimental import pallas as pl
from jax.experimental.pallas import tpu as pltpu


_SUBLANE = 32                        # row multiple valid for f32/bf16/int8 packing
_MAX_BLOCK_BYTES = 8 * 1024 * 1024   # per-input block cap (2 inputs x 2 bufs = 32 MiB)


def _cdiv(a, b):
    return -(-a // b)


def _round_up(a, m):
    return _cdiv(a, m) * m


def _is_v7x():
    """Best-effort generation probe (never raises)."""
    try:
        kind = jax.devices()[0].device_kind.lower()
    except Exception:
        kind = ""
    return ("v7" in kind) or ("tpu7" in kind)


def _poisson_kernel(x_ref, t_ref, o_ref, *, bias, n_rows, block_rows):
    """One grid step: partial Poisson-NLL reduction of a (block_rows, N) tile.

    Grid = (cores, steps).  The (1, 1, N) output block is resident across the
    trailing "arbitrary" axis (index_map constant in `i`) and acts as a tiny
    per-core vector accumulator; the final reduction is left to XLA.
    """
    c = pl.program_id(0)
    i = pl.program_id(1)

    @pl.when(i == 0)
    def _():
        o_ref[...] = jnp.zeros_like(o_ref)

    y = x_ref[...].astype(jnp.float32)
    t = t_ref[...].astype(jnp.float32)
    # Elementwise Poisson NLL term: log() goes to the EUP slot, mul/sub to VPU.
    term = y - t * jnp.log(y + jnp.float32(bias))

    # Tail mask: rows >= n_rows belong to the out-of-bounds part of the last
    # block.  Their contents are unspecified (no wrapper pad any more) and
    # log(garbage) can be NaN, which would survive `* 0`, so select instead.
    row0 = (c * pl.num_programs(1) + i) * block_rows
    rid = row0 + jax.lax.broadcasted_iota(jnp.int32, term.shape, 0)
    term = jnp.where(rid < n_rows, term, 0.0)

    # Reduce over the sublane (row) axis only -> (1, N) partial sums, so the
    # resident accumulator is a handful of vregs instead of a (tr, N) slab.
    o_ref[...] += term.sum(axis=0, keepdims=True)[None]


def poisson_loss_3d(output, target, bias=1e-12):
    """Pallas equivalent of PoissonLoss3d(bias).forward(output, target)."""
    assert bias > 0.0, "bias must be > 0 (log(0) otherwise)"
    lag = target.shape[1] - output.shape[1]
    # TODO(synk): fold the time-lag offset into the target BlockSpec via an
    # element-offset index_map so lag > 0 costs no extra HBM read+write of
    # target; kept as a plain XLA slice here for lowering safety (lag == 0
    # has zero wrapper copies).
    targ = target if lag == 0 else target[:, lag:, :]

    n_elems = output.size
    n_last = output.shape[-1]
    rows = n_elems // n_last

    # Free, contiguous reshapes (no HBM copies, unlike the old pad/reshape).
    x2 = output.reshape(rows, n_last)
    t2 = targ.reshape(rows, n_last)

    is_v7 = _is_v7x()
    n_cores = 2 if is_v7 else 1          # leading "parallel" axis only on 2-TC parts
    if rows < 2 * _SUBLANE * n_cores:    # not enough rows to feed two cores
        n_cores = 1

    # ---- tile sizing -------------------------------------------------------
    lane_pad = _round_up(n_last, 128)
    itemsize = max(output.dtype.itemsize, target.dtype.itemsize)
    row_bytes = lane_pad * itemsize
    tr_max = max(_SUBLANE, (_MAX_BLOCK_BYTES // row_bytes) // _SUBLANE * _SUBLANE)

    rows_per_core = _cdiv(rows, n_cores)
    steps = _cdiv(rows_per_core, tr_max)
    # Balance tr so the last step is nearly full: bounds the wasted streaming
    # to < one sublane group instead of up to a whole tr_max block.
    tr = _round_up(_cdiv(rows_per_core, steps), _SUBLANE)
    if tr >= rows:                       # tiny input: a single full-array block
        n_cores, steps, tr = 1, 1, rows

    kernel = functools.partial(_poisson_kernel, bias=float(bias),
                               n_rows=rows, block_rows=tr)

    in_spec = pl.BlockSpec((tr, n_last), lambda c, i: (c * steps + i, 0))
    out_spec = pl.BlockSpec((1, 1, n_last), lambda c, i: (c, 0, 0))

    partials = pl.pallas_call(
        kernel,
        out_shape=jax.ShapeDtypeStruct((n_cores, 1, n_last), jnp.float32),
        grid_spec=pltpu.PrefetchScalarGridSpec(
            num_scalar_prefetch=0,
            grid=(n_cores, steps),
            in_specs=[in_spec, in_spec],
            out_specs=out_spec,
        ),
        compiler_params=pltpu.CompilerParams(
            # Core axis is independent ("parallel" -> sharded across the two
            # TensorCores on multi-core parts); reduction axis is last and
            # "arbitrary" so the accumulator block stays resident.
            dimension_semantics=("parallel", "arbitrary"),
            # v7x has 64 MiB VMEM per TensorCore; v5e/v6e have 128 MiB.
            vmem_limit_bytes=(48 if is_v7 else 64) * 1024 * 1024,
        ),
    )(x2, t2)

    # Tiny (n_cores, 1, N) reduction + mean normalisation handled by XLA.
    return jnp.sum(partials) / jnp.float32(n_elems)


def poisson_loss_3d_ref(output, target, bias=1e-12):
    lag = target.shape[1] - output.shape[1]
    return jnp.mean(output - target[:, lag:, :] * jnp.log(output + bias))


if __name__ == "__main__":
    key = jax.random.PRNGKey(0)
    k1, k2 = jax.random.split(key)

    # 3-D inputs (B, T, N): prediction is a positive rate; target has a
    # longer time axis (lag = 2), matching the module's forward.
    B, T_OUT, T_TGT, N = 2, 8, 10, 32
    output = jax.random.uniform(k1, (B, T_OUT, N), dtype=jnp.float32,
                                minval=0.05, maxval=3.0)
    target = jax.random.uniform(k2, (B, T_TGT, N), dtype=jnp.float32,
                                minval=0.0, maxval=5.0)

    loss = poisson_loss_3d(output, target)
    jax.block_until_ready(loss)

    ref = poisson_loss_3d_ref(output, target)
    assert jnp.allclose(loss, ref, rtol=1e-5, atol=1e-5), (loss, ref)

    print("KERNEL_OK")
</pallas_src>

<mosaic_0001>
module attributes {stable_mosaic.version = 11 : i64} {
  func.func @_poisson_kernel(%arg0: i32, %arg1: i32, %arg2: memref<16x32xf32, #tpu.memory_space<vmem>>, %arg3: memref<16x32xf32, #tpu.memory_space<vmem>>, %arg4: memref<1x1x32xf32, #tpu.memory_space<vmem>>) attributes {dimension_semantics = [#tpu.dimension_semantics<parallel>, #tpu.dimension_semantics<arbitrary>], iteration_bounds = array<i64: 1, 1>, scalar_prefetch = 0 : i64, scratch_operands = 0 : i64, tpu.core_type = #tpu.core_type<tc>, window_params = [{transform_indices = @transform_0, window_bounds = array<i64: 16, 32>}, {transform_indices = @transform_1, window_bounds = array<i64: 16, 32>}, {transform_indices = @transform_2, window_bounds = array<i64: 1, 1, 32>}]} {
    %c0_i32 = arith.constant 0 : i32
    %0 = arith.cmpi eq, %arg1, %c0_i32 : i32
    %1 = arith.extui %0 : i1 to i32
    %c0_i32_0 = arith.constant 0 : i32
    %2 = arith.cmpi ne, %1, %c0_i32_0 : i32
    scf.if %2 {
      %cst_13 = arith.constant 0.000000e+00 : f32
      %26 = vector.broadcast %cst_13 : f32 to vector<1x1x32xf32>
      %c0_14 = arith.constant 0 : index
      %c0_15 = arith.constant 0 : index
      %c0_16 = arith.constant 0 : index
      %27 = vector.load %arg4[%c0_14, %c0_15, %c0_16] : memref<1x1x32xf32, #tpu.memory_space<vmem>>, vector<1x1x32xf32>
      tpu.vector_store %arg4[%c0_14, %c0_15, %c0_16], %26 {strides = array<i32>} : memref<1x1x32xf32, #tpu.memory_space<vmem>>, vector<1x1x32xf32>,
    } else {
    }
    %c0 = arith.constant 0 : index
    %c0_1 = arith.constant 0 : index
    %3 = vector.load %arg2[%c0, %c0_1] : memref<16x32xf32, #tpu.memory_space<vmem>>, vector<16x32xf32>
    %c0_2 = arith.constant 0 : index
    %c0_3 = arith.constant 0 : index
    %4 = vector.load %arg3[%c0_2, %c0_3] : memref<16x32xf32, #tpu.memory_space<vmem>>, vector<16x32xf32>
    %cst = arith.constant 9.99999996E-13 : f32
    %5 = vector.broadcast %cst : f32 to vector<16x32xf32>
    %6 = arith.addf %3, %5 : vector<16x32xf32>
    %7 = math.log %6 : vector<16x32xf32>
    %8 = arith.mulf %4, %7 : vector<16x32xf32>
    %9 = arith.subf %3, %8 : vector<16x32xf32>
    %c1_i32 = arith.constant 1 : i32
    %10 = arith.muli %arg0, %c1_i32 : i32
    %11 = arith.addi %10, %arg1 : i32
    %c16_i32 = arith.constant 16 : i32
    %12 = arith.muli %11, %c16_i32 : i32
    %13 = tpu.iota {dimensions = array<i32: 0>} : vector<16x32xi32>
    %14 = vector.broadcast %12 : i32 to vector<16x32xi32>
    %15 = arith.addi %14, %13 : vector<16x32xi32>
    %c16_i32_4 = arith.constant 16 : i32
    %16 = vector.broadcast %c16_i32_4 : i32 to vector<16x32xi32>
    %17 = arith.cmpi slt, %15, %16 : vector<16x32xi32>
    %cst_5 = arith.constant 0.000000e+00 : f32
    %18 = vector.broadcast %cst_5 : f32 to vector<16x32xf32>
    %19 = arith.select %17, %9, %18 : vector<16x32xi1>, vector<16x32xf32>
    %c0_6 = arith.constant 0 : index
    %c0_7 = arith.constant 0 : index
    %c0_8 = arith.constant 0 : index
    %20 = vector.load %arg4[%c0_6, %c0_7, %c0_8] : memref<1x1x32xf32, #tpu.memory_space<vmem>>, vector<1x1x32xf32>
    %cst_9 = arith.constant dense<0.000000e+00> : vector<32xf32>
    %21 = vector.multi_reduction <add>, %19, %cst_9 [0] : vector<16x32xf32> to vector<32xf32>
    %22 = vector.shape_cast %21 : vector<32xf32> to vector<1x32xf32>
    %23 = vector.shape_cast %22 : vector<1x32xf32> to vector<1x1x32xf32>
    %24 = arith.addf %20, %23 : vector<1x1x32xf32>
    %c0_10 = arith.constant 0 : index
    %c0_11 = arith.constant 0 : index
    %c0_12 = arith.constant 0 : index
    %25 = vector.load %arg4[%c0_10, %c0_11, %c0_12] : memref<1x1x32xf32, #tpu.memory_space<vmem>>, vector<1x1x32xf32>
    tpu.vector_store %arg4[%c0_10, %c0_11, %c0_12], %24 {strides = array<i32>} : memref<1x1x32xf32, #tpu.memory_space<vmem>>, vector<1x1x32xf32>,
    return
  }
  func.func @transform_0(%arg0: i32, %arg1: i32) -> (i32, i32) {
    %c1_i32 = arith.constant 1 : i32
    %0 = arith.muli %arg0, %c1_i32 : i32
    %1 = arith.addi %0, %arg1 : i32
    %c0_i32 = arith.constant 0 : i32
    %c0_i32_0 = arith.constant 0 : i32
    return %1, %c0_i32 : i32, i32
  }
  func.func @transform_1(%arg0: i32, %arg1: i32) -> (i32, i32) {
    %c1_i32 = arith.constant 1 : i32
    %0 = arith.muli %arg0, %c1_i32 : i32
    %1 = arith.addi %0, %arg1 : i32
    %c0_i32 = arith.constant 0 : i32
    %c0_i32_0 = arith.constant 0 : i32
    return %1, %c0_i32 : i32, i32
  }
  func.func @transform_2(%arg0: i32, %arg1: i32) -> (i32, i32, i32) {
    %c0_i32 = arith.constant 0 : i32
    %c0_i32_0 = arith.constant 0 : i32
    %c0_i32_1 = arith.constant 0 : i32
    return %arg0, %c0_i32, %c0_i32_0 : i32, i32, i32
  }
}

</mosaic_0001>

<bundles_post_ra>
// kernel: tpu_custom_call.1
= control target key start
LH: loop header
LB: loop body
LE: loop exit
PB: predicated region body
PF: predicated region fallthrough
CT: control target
= control target key end

     0   :  { %7 = vsyncpa [#allocation3], 0  ;;  %s240_s0 = inlined_call_operand.hbm [shape: f32[16,32], index: 0, kind: input, shape index: {}]   ;;  %s241_s1 = inlined_call_operand.hbm [shape: f32[16,32], index: 1, kind: input, shape index: {}]   ;;  %s242_s2 = inlined_call_operand.hbm [shape: f32[1,1,32], index: 2, kind: output, shape index: {}]  }
   0x1   :  { %8 = vsyncpa [#allocation6], 0 }
   0x2   :  { %9 = vsyncpa [#allocation4], 0  ;;  %s18_s11 = sshll.u32 %s240_s0, 4  ;;  %s208_s12 = smov [#allocation2]   ;;  %s19_s11 = int_to_ptr.hbm [resolvable:$true] %s18_s11 }
   0x3   :  { %s20_s13 = sshll.u32 %s208_s12, 4  ;;  %s35_s16 = sshll.u32 %s241_s1, 4  ;;  %s21_s13 = int_to_ptr.vmem [resolvable:$true] %s20_s13  ;;  %s36_s16 = int_to_ptr.hbm [resolvable:$true] %s35_s16 }
   0x4   :  { %s209_s17 = smov 128   ;;  %s210_s18 = smov 8  }
   0x5   :  { %26 = dma.hbm_to_vmem [thread:$0]  %s19_s11, 256, %s21_s13, [#allocation3], %s209_s17, %s209_s17, %s210_s18  }
   0x6   :  { %s211_s19 = smov [#allocation5]  }
   0x7   :  { %s37_s20 = sshll.u32 %s211_s19, 4  ;;  %s38_s20 = int_to_ptr.vmem [resolvable:$true] %s37_s20 }
   0x8   :  { %43 = dma.hbm_to_vmem [thread:$0]  %s36_s16, 256, %s38_s20, [#allocation6], %s209_s17, %s209_s17, %s210_s18  }
   0x9   :  { %202 = dma.done.wait [#allocation3], 256  }
   0xa   :  { %203 = vsyncadd [#allocation3], 4294967040 }
   0xb   :  { %204 = dma.done.wait [#allocation6], 256  }
   0xc   :  { %205 = vsyncadd [#allocation6], 4294967040  ;;  %vm60_vm0 = vcmask 253952   ;;  %v212_v0 = vmov 0.0   ;;  %v62_v1 = vld [vmem:[#allocation2] sm:$0xff]  ;;  %v63_v2 = vld [vmem:[#allocation2 + $0x8] sm:$0xff] }
   0xd   :  { %61 = vst.msk [vmem:[#allocation7] sm:$0x1] %vm60_vm0, %v212_v0  ;;  %v66_v3 = vadd.f32 1e-12, %v62_v1  ;;  %v67_v4 = vadd.f32 1e-12, %v63_v2 }
   0xe   :  { %v64_v6 = vld [vmem:[#allocation5] sm:$0xff]  ;;  %v65_v8 = vld [vmem:[#allocation5 + $0x8] sm:$0xff]  ;;  %vm89_vm1 = vcmask 261120   ;;  %s213_s0 = smov [#allocation7]   ;;  %s109_s23 = sshll.u32 %s242_s2, 4  ;;  %s110_s23 = int_to_ptr.hbm [resolvable:$true] %s109_s23 }
   0xf   :  { %126 = vlog2.f32 %v66_v3  ;;  %s107_s1 = sshll.u32 %s213_s0, 4  ;;  %s108_s1 = int_to_ptr.vmem [resolvable:$true] %s107_s1 }
  0x10   :  { %128 = vlog2.f32 %v67_v4 }
  0x14   :  { %v88_v23 = vld [vmem:[#allocation7] sm:$0x1] }
  0x15   :  { %v127_v5 = vpop.eup %126 }
  0x16   :  { %v129_v7 = vpop.eup %128  ;;  %v69_v9 = vmul.f32 0.6931472, %v127_v5 }
  0x17   :  { %v71_v10 = vmul.f32 0.6931472, %v129_v7 }
  0x18   :  { %v72_v11 = vmul.f32 %v69_v9, %v64_v6 }
  0x19   :  { %v73_v12 = vmul.f32 %v71_v10, %v65_v8 }
  0x1a   :  { %v74_v13 = vsub.f32 %v62_v1, %v72_v11 }
  0x1b   :  { %v75_v14 = vsub.f32 %v63_v2, %v73_v12 }
  0x1c   :  { %v90_v15 = vsel %vm89_vm1, %v74_v13, 0.0 }
  0x1d   :  { %v91_v16 = vsel %vm89_vm1, %v75_v14, 0.0 }
  0x1e   :  { %v92_v17 = vadd.f32 %v91_v16, %v90_v15 }
  0x20   :  { %v93_v18 = vrot.slane %v92_v17, 4 }
  0x22   :  { %v94_v19 = vadd.f32 %v93_v18, %v92_v17 }
  0x24   :  { %v95_v20 = vrot.slane %v94_v19, 2 }
  0x26   :  { %v96_v21 = vadd.f32 %v95_v20, %v94_v19 }
  0x28   :  { %v97_v22 = vrot.slane %v96_v21, 1 }
  0x2a   :  { %v98_v24 = vadd.f32 %v97_v22, %v96_v21 }
  0x2c   :  { %v99_v25 = vadd.f32 %v98_v24, %v88_v23 }
  0x2e   :  { %101 = vst.msk [vmem:[#allocation7] sm:$0x1] %vm60_vm0, %v99_v25 }
  0x2f   :  { %112 = dma.vmem_to_hbm [thread:$0]  %s108_s1, 16, %s110_s23, [#allocation4]  }
  0x30   :  { %206 = dma.done.wait [#allocation4], 16  }
  0x31   :  { %207 = vsyncadd [#allocation4], 4294967280 }
  0x32   :  { %117 = vsyncpa [#allocation3], 1 }
  0x33   :  { %118 = vsyncpa [#allocation6], 1 }
  0x34   :  { %119 = vsyncpa [#allocation4], 1 }

</bundles_post_ra>
